<compile_context>
chip_gen: v7x
topology: tpu7x:2x2x1
jax: 0.10.0
libtpu: 0.0.40
codegen_flags: <defaults>
</compile_context>

<pallas_src>
import functools

import jax
import jax.numpy as jnp
from jax import lax
from jax.experimental import pallas as pl
from jax.experimental.pallas import tpu as pltpu


def _kl_div_kernel(x_ref, t_ref, lab_ref, sum_ref, cnt_ref, acc_sum, acc_cnt, *,
                   inv_T, ignore_index, hw, tile_pix, n_inner, need_tail_mask,
                   approx_recip):
    p = pl.program_id(2)               # innermost pixel-tile index ("arbitrary")
    n_p = pl.num_programs(2)

    @pl.when(p == 0)
    def _():
        acc_sum[...] = jnp.zeros_like(acc_sum)
        acc_cnt[...] = jnp.zeros_like(acc_cnt)

    x = x_ref[...].astype(jnp.float32)                 # (C, tile) logits
    t = t_ref[...].astype(jnp.float32)

    # log_softmax(x/T) and softmax(t/T) pieces along the channel (sublane) axis.
    # 1/T is folded into the max-subtract (T > 0), saving one full (C, tile)
    # pass per input compared with scaling x and t separately.
    x_max = jnp.max(x, axis=0, keepdims=True)          # (1, tile)
    t_max = jnp.max(t, axis=0, keepdims=True)          # (1, tile)
    if inv_T != 1.0:
        x_sh = (x - x_max) * inv_T                     # (C, tile)
        t_sh = (t - t_max) * inv_T
    else:
        x_sh = x - x_max
        t_sh = t - t_max

    x_sum = jnp.sum(jnp.exp(x_sh), axis=0, keepdims=True)   # (1, tile)
    t_exp = jnp.exp(t_sh)                                    # (C, tile)
    t_sum = jnp.sum(t_exp, axis=0, keepdims=True)            # (1, tile)

    # Per-pixel KL with the 1/t_sum factored out and the two logs fused:
    #   sum_c p_tgt_c * (log p_tgt_c - log p_in_c)
    #     = (1/t_sum) * sum_c t_exp_c * (t_sh_c - x_sh_c) + log(x_sum / t_sum)
    recip_t = pl.reciprocal(t_sum, approx=approx_recip)
    num = jnp.sum(t_exp * (t_sh - x_sh), axis=0, keepdims=True)   # (1, tile)
    kl = num * recip_t + jnp.log(x_sum * recip_t)

    lab = lab_ref[...].astype(jnp.int32)               # (1, tile)
    valid = lab != ignore_index
    if need_tail_mask:
        # Global pixel offset of this tile (un-clamped), so duplicate tiles
        # that the index_map clamped back in range contribute nothing.
        gt = pl.program_id(1) * n_inner + p
        idx = lax.broadcasted_iota(jnp.int32, (1, tile_pix), 1)
        valid = jnp.logical_and(valid, (gt * tile_pix + idx) < hw)

    # Lane-wise accumulation only; masked lanes MUST go through a select
    # (garbage reads past the array end can be inf/NaN -- never use kl * mask).
    acc_sum[...] += jnp.where(valid, kl, 0.0)
    acc_cnt[...] += valid.astype(jnp.float32)

    @pl.when(p == n_p - 1)
    def _():
        total = jnp.sum(acc_sum[...])                  # one cross-lane reduce
        count = jnp.sum(acc_cnt[...])
        sum_ref[...] = jnp.full((1, 128), total, dtype=jnp.float32)
        cnt_ref[...] = jnp.full((1, 128), count, dtype=jnp.float32)


def _vmem_plan(hw, c, x_dtype):
    """Pick the pixel-tile width and a matching vmem_limit_bytes.

    Accounts for the real input itemsize (bf16 halves HBM traffic), sublane
    padding of the (C, tile) VMEM tiles, the label stream and the two (1, tile)
    scratch accumulators, and the per-generation VMEM capacity.
    """
    try:
        capacity = int(pltpu.get_tpu_info().vmem_capacity_bytes)
    except Exception:
        capacity = 64 * 1024 * 1024   # v7x per-TC physical; smallest across gens

    x_item = jnp.dtype(x_dtype).itemsize
    sub = max(1, 32 // x_item)                     # sublane group: 8 f32, 16 bf16
    xt_bytes_per_col = -(-c // sub) * 32           # padded (C, tile) bytes / lane-col
    lab_bytes_per_col = 32                         # (1, tile) pads to one 32B group
    scratch_bytes_per_col = 2 * 32                 # two (1, tile) f32 accumulators
    # x and t streams, each double-buffered; labels double-buffered; scratch once.
    per_col = 2 * 2 * xt_bytes_per_col + 2 * lab_bytes_per_col + scratch_bytes_per_col

    budget = int(min(capacity, 64 * 1024 * 1024) * 0.5)
    tile = (budget // per_col) // 128 * 128
    tile = max(128, min(65536, tile))
    if hw <= tile:
        tile = hw

    est_bytes = per_col * max(tile, 128)
    vmem_limit = int(min(capacity * 0.9,
                         max(est_bytes * 1.5, 32 * 1024 * 1024)))
    return tile, vmem_limit


def kl_divergence_loss(input_nchw, target_nchw, label, *, ignore_index=255,
                       T=1.0, approx_recip=False):
    """Pallas implementation of KLDivergenceLoss.forward.

    input_nchw, target_nchw: (B, C, H, W) float logits (f32 or bf16 -- pass bf16
        straight from the producer to halve HBM traffic; the kernel upcasts).
    label: (B, H, W) integer labels (any int dtype; passed through un-cast).
    approx_recip: use the EUP approximate reciprocal (small v7x win, ~12-bit
        accurate -- loosen tolerances before enabling).
    Returns a float32 scalar loss.
    """
    B, C, H, W = input_nchw.shape
    HW = H * W
    assert T > 0, "temperature must be positive"

    # Zero-copy layout: pixels on the lane axis, channels on the sublane axis.
    x = input_nchw.reshape(B, C, HW)
    t = target_nchw.reshape(B, C, HW)
    if not jnp.issubdtype(label.dtype, jnp.integer):
        label = label.astype(jnp.int32)
    lab = label.reshape(B, 1, HW)

    tile_pix, vmem_limit = _vmem_plan(HW, C, x.dtype)
    n_pix_tiles = pl.cdiv(HW, tile_pix)

    # Extra "parallel" pixel-chunk axis so v7x megacore gets work even at B=1.
    n_outer = 2 if n_pix_tiles >= 2 else 1
    n_inner = pl.cdiv(n_pix_tiles, n_outer)
    need_tail_mask = (n_outer * n_inner * tile_pix) != HW

    def pix_block(b, o, p):
        return jnp.minimum(o * n_inner + p, n_pix_tiles - 1)

    kernel = functools.partial(
        _kl_div_kernel,
        inv_T=1.0 / float(T),
        ignore_index=int(ignore_index),
        hw=HW,
        tile_pix=tile_pix,
        n_inner=n_inner,
        need_tail_mask=need_tail_mask,
        approx_recip=approx_recip,
    )

    x_item = jnp.dtype(x.dtype).itemsize
    lab_item = jnp.dtype(lab.dtype).itemsize
    cost = pl.CostEstimate(
        flops=10 * B * C * HW,
        transcendentals=2 * B * C * HW,
        bytes_accessed=B * HW * (2 * C * x_item + lab_item)
                       + 2 * B * n_outer * 128 * 4,
    )

    sum_out, cnt_out = pl.pallas_call(
        kernel,
        out_shape=(
            jax.ShapeDtypeStruct((B, n_outer, 1, 128), jnp.float32),
            jax.ShapeDtypeStruct((B, n_outer, 1, 128), jnp.float32),
        ),
        grid_spec=pltpu.PrefetchScalarGridSpec(
            num_scalar_prefetch=0,
            grid=(B, n_outer, n_inner),
            in_specs=[
                pl.BlockSpec((None, C, tile_pix), lambda b, o, p: (b, 0, pix_block(b, o, p))),
                pl.BlockSpec((None, C, tile_pix), lambda b, o, p: (b, 0, pix_block(b, o, p))),
                pl.BlockSpec((None, 1, tile_pix), lambda b, o, p: (b, 0, pix_block(b, o, p))),
            ],
            out_specs=[
                pl.BlockSpec((None, None, 1, 128), lambda b, o, p: (b, o, 0, 0)),
                pl.BlockSpec((None, None, 1, 128), lambda b, o, p: (b, o, 0, 0)),
            ],
            scratch_shapes=[
                pltpu.VMEM((1, tile_pix), jnp.float32),   # per-lane KL accumulator
                pltpu.VMEM((1, tile_pix), jnp.float32),   # per-lane valid count
            ],
        ),
        compiler_params=pltpu.CompilerParams(
            dimension_semantics=("parallel", "parallel", "arbitrary"),
            vmem_limit_bytes=vmem_limit,
        ),
        cost_estimate=cost,
    )(x, t, lab)

    total_sum = jnp.sum(sum_out[:, :, 0, 0])
    total_cnt = jnp.sum(cnt_out[:, :, 0, 0])
    denom = total_cnt * C
    loss = jnp.where(denom > 0, total_sum / denom, jnp.float32(0.0))
    return (T * T) * loss


def _reference_loss(input_nchw, target_nchw, label, *, ignore_index=255, T=1.0):
    """Pure-JAX reference replicating the PyTorch module exactly."""
    B, C, H, W = input_nchw.shape
    log_p_in = jax.nn.log_softmax(input_nchw.astype(jnp.float32) / T, axis=1)
    p_tgt = jax.nn.softmax(target_nchw.astype(jnp.float32) / T, axis=1)
    lp = jnp.transpose(log_p_in, (0, 2, 3, 1)).reshape(-1, C)
    pt = jnp.transpose(p_tgt, (0, 2, 3, 1)).reshape(-1, C)
    lab = label.reshape(-1)
    valid = lab != ignore_index
    kl = pt * (jnp.log(pt) - lp)                    # softmax targets are > 0
    kl = jnp.where(valid[:, None], kl, 0.0)
    denom = jnp.sum(valid) * C
    return (T * T) * jnp.sum(kl) / denom


if __name__ == "__main__":
    key = jax.random.PRNGKey(0)
    k1, k2, k3 = jax.random.split(key, 3)

    B, C, H, W = 2, 4, 16, 16
    ignore_index = 255

    x = jax.random.normal(k1, (B, C, H, W), dtype=jnp.float32)
    t = jax.random.normal(k2, (B, C, H, W), dtype=jnp.float32)
    # Labels in [0, C) with ~20% of pixels set to ignore_index.
    lab = jax.random.randint(k3, (B, H, W), 0, C, dtype=jnp.int32)
    ignore_mask = jax.random.uniform(k3, (B, H, W)) < 0.2
    lab = jnp.where(ignore_mask, ignore_index, lab)

    # T = 1 path.
    loss = kl_divergence_loss(x, t, lab, ignore_index=ignore_index, T=1.0)
    loss = jax.block_until_ready(loss)
    ref = _reference_loss(x, t, lab, ignore_index=ignore_index, T=1.0)
    assert jnp.allclose(loss, ref, rtol=2e-5, atol=1e-6), (loss, ref)

    # Temperature path (exercises the folded 1/T scaling).
    loss2 = kl_divergence_loss(x, t, lab, ignore_index=ignore_index, T=2.0)
    loss2 = jax.block_until_ready(loss2)
    ref2 = _reference_loss(x, t, lab, ignore_index=ignore_index, T=2.0)
    assert jnp.allclose(loss2, ref2, rtol=2e-5, atol=1e-6), (loss2, ref2)

    print("KERNEL_OK")
</pallas_src>

<mosaic_0001>
module attributes {stable_mosaic.version = 11 : i64} {
  func.func @_kl_div_kernel(%arg0: i32, %arg1: i32, %arg2: i32, %arg3: memref<1x4x256xf32, #tpu.memory_space<vmem>>, %arg4: memref<1x4x256xf32, #tpu.memory_space<vmem>>, %arg5: memref<1x1x256xi32, #tpu.memory_space<vmem>>, %arg6: memref<1x1x1x128xf32, #tpu.memory_space<vmem>>, %arg7: memref<1x1x1x128xf32, #tpu.memory_space<vmem>>, %arg8: memref<1x256xf32, #tpu.memory_space<vmem>>, %arg9: memref<1x256xf32, #tpu.memory_space<vmem>>) attributes {dimension_semantics = [#tpu.dimension_semantics<parallel>, #tpu.dimension_semantics<parallel>, #tpu.dimension_semantics<arbitrary>], iteration_bounds = array<i64: 2, 1, 1>, scalar_prefetch = 0 : i64, scratch_operands = 2 : i64, tpu.core_type = #tpu.core_type<tc>, window_params = [{transform_indices = @transform_0, window_bounds = array<i64: 1, 4, 256>}, {transform_indices = @transform_1, window_bounds = array<i64: 1, 4, 256>}, {transform_indices = @transform_2, window_bounds = array<i64: 1, 1, 256>}, {transform_indices = @transform_3, window_bounds = array<i64: 1, 1, 1, 128>}, {transform_indices = @transform_4, window_bounds = array<i64: 1, 1, 1, 128>}]} {
    %c0_i32 = arith.constant 0 : i32
    %0 = arith.cmpi eq, %arg2, %c0_i32 : i32
    %1 = arith.extui %0 : i1 to i32
    %c0_i32_0 = arith.constant 0 : i32
    %2 = arith.cmpi ne, %1, %c0_i32_0 : i32
    scf.if %2 {
      %cst_24 = arith.constant 0.000000e+00 : f32
      %47 = vector.broadcast %cst_24 : f32 to vector<1x256xf32>
      %c0_25 = arith.constant 0 : index
      %c0_26 = arith.constant 0 : index
      %48 = vector.load %arg8[%c0_25, %c0_26] : memref<1x256xf32, #tpu.memory_space<vmem>>, vector<1x256xf32>
      tpu.vector_store %arg8[%c0_25, %c0_26], %47 {strides = array<i32>} : memref<1x256xf32, #tpu.memory_space<vmem>>, vector<1x256xf32>,
      %cst_27 = arith.constant 0.000000e+00 : f32
      %49 = vector.broadcast %cst_27 : f32 to vector<1x256xf32>
      %c0_28 = arith.constant 0 : index
      %c0_29 = arith.constant 0 : index
      %50 = vector.load %arg9[%c0_28, %c0_29] : memref<1x256xf32, #tpu.memory_space<vmem>>, vector<1x256xf32>
      tpu.vector_store %arg9[%c0_28, %c0_29], %49 {strides = array<i32>} : memref<1x256xf32, #tpu.memory_space<vmem>>, vector<1x256xf32>,
    } else {
    }
    %c0 = arith.constant 0 : index
    %c0_1 = arith.constant 0 : index
    %c0_2 = arith.constant 0 : index
    %3 = vector.load %arg3[%c0, %c0_1, %c0_2] : memref<1x4x256xf32, #tpu.memory_space<vmem>>, vector<1x4x256xf32>
    %4 = vector.shape_cast %3 : vector<1x4x256xf32> to vector<4x256xf32>
    %c0_3 = arith.constant 0 : index
    %c0_4 = arith.constant 0 : index
    %c0_5 = arith.constant 0 : index
    %5 = vector.load %arg4[%c0_3, %c0_4, %c0_5] : memref<1x4x256xf32, #tpu.memory_space<vmem>>, vector<1x4x256xf32>
    %6 = vector.shape_cast %5 : vector<1x4x256xf32> to vector<4x256xf32>
    %cst = arith.constant dense<0xFF800000> : vector<256xf32>
    %7 = vector.multi_reduction <maximumf>, %4, %cst [0] : vector<4x256xf32> to vector<256xf32>
    %8 = vector.shape_cast %7 : vector<256xf32> to vector<1x256xf32>
    %cst_6 = arith.constant dense<0xFF800000> : vector<256xf32>
    %9 = vector.multi_reduction <maximumf>, %6, %cst_6 [0] : vector<4x256xf32> to vector<256xf32>
    %10 = vector.shape_cast %9 : vector<256xf32> to vector<1x256xf32>
    %11 = vector.broadcast %8 : vector<1x256xf32> to vector<4x256xf32>
    %12 = arith.subf %4, %11 : vector<4x256xf32>
    %13 = vector.broadcast %10 : vector<1x256xf32> to vector<4x256xf32>
    %14 = arith.subf %6, %13 : vector<4x256xf32>
    %15 = math.exp %12 : vector<4x256xf32>
    %cst_7 = arith.constant dense<0.000000e+00> : vector<256xf32>
    %16 = vector.multi_reduction <add>, %15, %cst_7 [0] : vector<4x256xf32> to vector<256xf32>
    %17 = vector.shape_cast %16 : vector<256xf32> to vector<1x256xf32>
    %18 = math.exp %14 : vector<4x256xf32>
    %cst_8 = arith.constant dense<0.000000e+00> : vector<256xf32>
    %19 = vector.multi_reduction <add>, %18, %cst_8 [0] : vector<4x256xf32> to vector<256xf32>
    %20 = vector.shape_cast %19 : vector<256xf32> to vector<1x256xf32>
    %21 = tpu.reciprocal %20 : vector<1x256xf32> -> vector<1x256xf32>
    %22 = arith.subf %14, %12 : vector<4x256xf32>
    %23 = arith.mulf %18, %22 : vector<4x256xf32>
    %cst_9 = arith.constant dense<0.000000e+00> : vector<256xf32>
    %24 = vector.multi_reduction <add>, %23, %cst_9 [0] : vector<4x256xf32> to vector<256xf32>
    %25 = vector.shape_cast %24 : vector<256xf32> to vector<1x256xf32>
    %26 = arith.mulf %25, %21 : vector<1x256xf32>
    %27 = arith.mulf %17, %21 : vector<1x256xf32>
    %28 = math.log %27 : vector<1x256xf32>
    %29 = arith.addf %26, %28 : vector<1x256xf32>
    %c0_10 = arith.constant 0 : index
    %c0_11 = arith.constant 0 : index
    %c0_12 = arith.constant 0 : index
    %30 = vector.load %arg5[%c0_10, %c0_11, %c0_12] : memref<1x1x256xi32, #tpu.memory_space<vmem>>, vector<1x1x256xi32>
    %31 = vector.shape_cast %30 : vector<1x1x256xi32> to vector<1x256xi32>
    %c255_i32 = arith.constant 255 : i32
    %32 = vector.broadcast %c255_i32 : i32 to vector<1x256xi32>
    %33 = arith.cmpi ne, %31, %32 : vector<1x256xi32>
    %c0_13 = arith.constant 0 : index
    %c0_14 = arith.constant 0 : index
    %34 = vector.load %arg8[%c0_13, %c0_14] : memref<1x256xf32, #tpu.memory_space<vmem>>, vector<1x256xf32>
    %cst_15 = arith.constant 0.000000e+00 : f32
    %35 = vector.broadcast %cst_15 : f32 to vector<1x256xf32>
    %36 = arith.select %33, %29, %35 : vector<1x256xi1>, vector<1x256xf32>
    %37 = arith.addf %34, %36 : vector<1x256xf32>
    %c0_16 = arith.constant 0 : index
    %c0_17 = arith.constant 0 : index
    %38 = vector.load %arg8[%c0_16, %c0_17] : memref<1x256xf32, #tpu.memory_space<vmem>>, vector<1x256xf32>
    tpu.vector_store %arg8[%c0_16, %c0_17], %37 {strides = array<i32>} : memref<1x256xf32, #tpu.memory_space<vmem>>, vector<1x256xf32>,
    %c0_18 = arith.constant 0 : index
    %c0_19 = arith.constant 0 : index
    %39 = vector.load %arg9[%c0_18, %c0_19] : memref<1x256xf32, #tpu.memory_space<vmem>>, vector<1x256xf32>
    %40 = arith.extui %33 : vector<1x256xi1> to vector<1x256xi32>
    %41 = arith.sitofp %40 : vector<1x256xi32> to vector<1x256xf32>
    %42 = arith.addf %39, %41 : vector<1x256xf32>
    %c0_20 = arith.constant 0 : index
    %c0_21 = arith.constant 0 : index
    %43 = vector.load %arg9[%c0_20, %c0_21] : memref<1x256xf32, #tpu.memory_space<vmem>>, vector<1x256xf32>
    tpu.vector_store %arg9[%c0_20, %c0_21], %42 {strides = array<i32>} : memref<1x256xf32, #tpu.memory_space<vmem>>, vector<1x256xf32>,
    %c0_i32_22 = arith.constant 0 : i32
    %44 = arith.cmpi eq, %arg2, %c0_i32_22 : i32
    %45 = arith.extui %44 : i1 to i32
    %c0_i32_23 = arith.constant 0 : i32
    %46 = arith.cmpi ne, %45, %c0_i32_23 : i32
    scf.if %46 {
      %c0_24 = arith.constant 0 : index
      %c0_25 = arith.constant 0 : index
      %47 = vector.load %arg8[%c0_24, %c0_25] : memref<1x256xf32, #tpu.memory_space<vmem>>, vector<1x256xf32>
      %48 = vector.shape_cast %47 : vector<1x256xf32> to vector<1x1x256xf32>
      %cst_26 = arith.constant dense<0.000000e+00> : vector<1xf32>
      %49 = vector.multi_reduction <add>, %48, %cst_26 [1, 2] : vector<1x1x256xf32> to vector<1xf32>
      %50 = vector.shape_cast %49 : vector<1xf32> to vector<1x1x1xf32>
      %51 = vector.extract %50[0, 0, 0] : f32 from vector<1x1x1xf32>
      %c0_27 = arith.constant 0 : index
      %c0_28 = arith.constant 0 : index
      %52 = vector.load %arg9[%c0_27, %c0_28] : memref<1x256xf32, #tpu.memory_space<vmem>>, vector<1x256xf32>
      %53 = vector.shape_cast %52 : vector<1x256xf32> to vector<1x1x256xf32>
      %cst_29 = arith.constant dense<0.000000e+00> : vector<1xf32>
      %54 = vector.multi_reduction <add>, %53, %cst_29 [1, 2] : vector<1x1x256xf32> to vector<1xf32>
      %55 = vector.shape_cast %54 : vector<1xf32> to vector<1x1x1xf32>
      %56 = vector.extract %55[0, 0, 0] : f32 from vector<1x1x1xf32>
      %57 = vector.broadcast %51 : f32 to vector<1x128xf32>
      %c0_30 = arith.constant 0 : index
      %c0_31 = arith.constant 0 : index
      %c0_32 = arith.constant 0 : index
      %c0_33 = arith.constant 0 : index
      %58 = vector.load %arg6[%c0_30, %c0_31, %c0_32, %c0_33] : memref<1x1x1x128xf32, #tpu.memory_space<vmem>>, vector<1x1x1x128xf32>
      %59 = vector.shape_cast %58 : vector<1x1x1x128xf32> to vector<1x128xf32>
      %60 = vector.shape_cast %57 : vector<1x128xf32> to vector<1x1x1x128xf32>
      tpu.vector_store %arg6[%c0_30, %c0_31, %c0_32, %c0_33], %60 {strides = array<i32>} : memref<1x1x1x128xf32, #tpu.memory_space<vmem>>, vector<1x1x1x128xf32>,
      %61 = vector.broadcast %56 : f32 to vector<1x128xf32>
      %c0_34 = arith.constant 0 : index
      %c0_35 = arith.constant 0 : index
      %c0_36 = arith.constant 0 : index
      %c0_37 = arith.constant 0 : index
      %62 = vector.load %arg7[%c0_34, %c0_35, %c0_36, %c0_37] : memref<1x1x1x128xf32, #tpu.memory_space<vmem>>, vector<1x1x1x128xf32>
      %63 = vector.shape_cast %62 : vector<1x1x1x128xf32> to vector<1x128xf32>
      %64 = vector.shape_cast %61 : vector<1x128xf32> to vector<1x1x1x128xf32>
      tpu.vector_store %arg7[%c0_34, %c0_35, %c0_36, %c0_37], %64 {strides = array<i32>} : memref<1x1x1x128xf32, #tpu.memory_space<vmem>>, vector<1x1x1x128xf32>,
    } else {
    }
    return
  }
  func.func @transform_0(%arg0: i32, %arg1: i32, %arg2: i32) -> (i32, i32, i32) {
    %c1_i32 = arith.constant 1 : i32
    %0 = arith.muli %arg1, %c1_i32 : i32
    %1 = arith.addi %0, %arg2 : i32
    %c0_i32 = arith.constant 0 : i32
    %2 = arith.minsi %1, %c0_i32 : i32
    %c0_i32_0 = arith.constant 0 : i32
    %c0_i32_1 = arith.constant 0 : i32
    return %arg0, %c0_i32_0, %2 : i32, i32, i32
  }
  func.func @transform_1(%arg0: i32, %arg1: i32, %arg2: i32) -> (i32, i32, i32) {
    %c1_i32 = arith.constant 1 : i32
    %0 = arith.muli %arg1, %c1_i32 : i32
    %1 = arith.addi %0, %arg2 : i32
    %c0_i32 = arith.constant 0 : i32
    %2 = arith.minsi %1, %c0_i32 : i32
    %c0_i32_0 = arith.constant 0 : i32
    %c0_i32_1 = arith.constant 0 : i32
    return %arg0, %c0_i32_0, %2 : i32, i32, i32
  }
  func.func @transform_2(%arg0: i32, %arg1: i32, %arg2: i32) -> (i32, i32, i32) {
    %c1_i32 = arith.constant 1 : i32
    %0 = arith.muli %arg1, %c1_i32 : i32
    %1 = arith.addi %0, %arg2 : i32
    %c0_i32 = arith.constant 0 : i32
    %2 = arith.minsi %1, %c0_i32 : i32
    %c0_i32_0 = arith.constant 0 : i32
    %c0_i32_1 = arith.constant 0 : i32
    return %arg0, %c0_i32_0, %2 : i32, i32, i32
  }
  func.func @transform_3(%arg0: i32, %arg1: i32, %arg2: i32) -> (i32, i32, i32, i32) {
    %c0_i32 = arith.constant 0 : i32
    %c0_i32_0 = arith.constant 0 : i32
    %c0_i32_1 = arith.constant 0 : i32
    return %arg0, %arg1, %c0_i32, %c0_i32_0 : i32, i32, i32, i32
  }
  func.func @transform_4(%arg0: i32, %arg1: i32, %arg2: i32) -> (i32, i32, i32, i32) {
    %c0_i32 = arith.constant 0 : i32
    %c0_i32_0 = arith.constant 0 : i32
    %c0_i32_1 = arith.constant 0 : i32
    return %arg0, %arg1, %c0_i32, %c0_i32_0 : i32, i32, i32, i32
  }
}

</mosaic_0001>

<bundles_post_ra>
// kernel: tpu_custom_call.1
= control target key start
LH: loop header
LB: loop body
LE: loop exit
PB: predicated region body
PF: predicated region fallthrough
CT: control target
= control target key end

     0   :  { %10 = vsyncpa [#allocation5], 0  ;;  %s1389_s0 = inlined_call_operand.hbm [shape: f32[2,4,256], index: 0, kind: input, shape index: {}]   ;;  %s1390_s1 = inlined_call_operand.hbm [shape: f32[2,4,256], index: 1, kind: input, shape index: {}]   ;;  %s1391_s2 = inlined_call_operand.vmem [shape: s32[2,1,256], index: 2, kind: input, shape index: {}]   ;;  %s1392_s3 = inlined_call_operand.hbm [shape: f32[2,1,1,128], index: 3, kind: output, shape index: {0}]   ;;  %s1393_s4 = inlined_call_operand.hbm [shape: f32[2,1,1,128], index: 4, kind: output, shape index: {1}]  }
   0x1   :  { %12 = vsyncpa [#allocation5 + $0x1], 0 }
   0x2   :  { %13 = vsyncpa [#allocation8], 0 }
   0x3   :  { %15 = vsyncpa [#allocation8 + $0x1], 0 }
   0x4   :  { %16 = vsyncpa [#allocation6], 0 }
   0x5   :  { %18 = vsyncpa [#allocation6 + $0x1], 0 }
   0x6   :  { %19 = vsyncpa [#allocation11], 0 }
   0x7   :  { %21 = vsyncpa [#allocation11 + $0x1], 0  ;;  %s1094_s15 = smov 0   ;;  %s1096_s16 = smov 0  }
   0x8   :  { %s1098_s17 = smov 0   ;;  %s1100_s18 = smov 0  }
   0x9   :  { %s1102_s19 = smov 0   ;;  %s1104_s20 = smov 0  }
   0xa LB: > { %s770_s21 = sadd.s32 4294967295, %s1061_s20   ;;  %s771_s22 = sadd.s32 4294967294, %s1061_s20   ;;  %s1061_s20 = sphi %s1104_s20, %s27_s20   ;;  %s1057_s19 = sphi %s1102_s19, %s1415_s19   ;;  %s1053_s18 = sphi %s1100_s18, %s1414_s18   ;;  %s1049_s17 = sphi %s1098_s17, %s1413_s17   ;;  %s1045_s16 = sphi %s1096_s16, %s1412_s16   ;;  %s1041_s15 = sphi %s1094_s15, %s1411_s15  }
   0xb   : > { %s46_s23 = sadd.s32 1, %s1057_s19  ;;  %s61_s24 = sadd.s32 1, %s1049_s17 }
   0xc   : > { %p48_p0 = scmp.ge.s32.totalorder %s46_s23, 2  ;;  %p68_p1 = scmp.ne.s32.totalorder %s1049_s17, %s1045_s16 }
   0xd   : > { %p69_p2 = scmp.eq.s32.totalorder %s1061_s20, 0  ;;  %p74_p3 = scmp.ne.s32.totalorder %s1045_s16, %s1041_s15 }
   0xe   : > { %s1417_s23 = smov (%p48_p0, %s46_s23), 0  ;;  %p75_p5 = scmp.eq.s32.totalorder %s770_s21, 0 }
   0xf   : > { %p1135_p4 = por %p69_p2, %p68_p1  ;;  %s56_s26 = ssub.s32 %s1057_s19, %s1417_s23 }
  0x10   : > { %p168_p6 = scmp.eq.s32.totalorder %s770_s21, 1  ;;  %p59_p7 = scmp.eq.s32.totalorder %s56_s26, 0 }
  0x11   : > { %p1141_p8 = por %p75_p5, %p74_p3  ;;  %p174_p10 = scmp.eq.s32.totalorder %s771_s22, 1 }
  0x12   : > { %p1145_p9 = por %p168_p6, %p68_p1  ;;  %p817_p13 = scmp.lt.s32.totalorder %s1061_s20, 2 }
  0x13   : > { %s1397_s27 = scalar_select %p1141_p8, 1, 0 }
  0x14   : > { %s1398_s28 = scalar_select %p1145_p9, 1, 0 }
  0x15   : > { %s1150_s29 = scalar_select %p59_p7, %s1049_s17, %s61_s24  }
  0x16   : > { %p1152_p11 = por %p174_p10, %p74_p3  ;;  %s1159_s5 = sand.u32 1, %s1049_s17  }
  0x17   : > { %s774_s6 = sshll.u32 %s1159_s5, 3  ;;  %s789_s7 = sshll.u32 %s1057_s19, 7 }
  0x18   : > { %s1399_s30 = scalar_select %p1152_p11, 1, 0 }
  0x19   : > { %s1168_s10 = scalar_lea.hbm %s1389_s0, %s789_s7  ;;  %s226_s11 = scalar_lea.vmem [#allocation4], %s774_s6 }
  0x1a   : > { %s239_s12 = sshll.u32 %s226_s11, 4  ;;  %p1176_p0 = pnand %p817_p13, %p1135_p4  ;;  %s1172_s12 = int_to_ptr.vmem [resolvable:$true] %s239_s12 }
  0x1b   : > { %s223_s14 = scalar_lea.sflag [#allocation5], %s1159_s5  ;;  %s883_s21 = scalar_lea.hbm %s1168_s10, 128 }
  0x1c   : > { %p884_p3 = scmp.ne.s32.totalorder %s1168_s10, %s883_s21  ;;  %p885_p5 = pneg %p1176_p0 }
  0x1d   : > { %s888_s25 = scalar_lea.hbm %s1389_s0, 256  ;;  %p889_p4 = scmp.lt.u32.totalorder %s1168_s10, %s1389_s0 }
  0x1e   : > { %p886_p6 = pnand %p885_p5, %p884_p3  ;;  %p890_p10 = scmp.lt.u32.totalorder %s888_s25, %s883_s21 }
  0x1f   : > { %p892_p12 = scmp.lt.u32.totalorder %s883_s21, %s1168_s10 }
  0x20   : > { %p887_p7 = pneg %p886_p6  ;;  %p891_p13 = por %p890_p10, %p889_p4 }
  0x22   : > { %p893_p1 = por %p892_p12, %p891_p13 }
  0x24   : > { %p894_p2 = pnand %p893_p1, %p887_p7 }
  0x26   : > { %897 = shalt.err (!%p894_p2)
}
  0x27   : > { %s898_s9 = scalar_lea.vmem %s1172_s12, 128  ;;  %s1063_s11 = smov [#allocation4]  }
  0x28   : > { %p899_p3 = scmp.ne.s32.totalorder %s1172_s12, %s898_s9  ;;  %s903_s22 = sshll.u32 %s1063_s11, 4  ;;  %s904_s22 = int_to_ptr.vmem [resolvable:$false] %s903_s22 }
  0x29   : > { %s905_s24 = scalar_lea.vmem %s904_s22, 256  ;;  %p906_p9 = scmp.lt.s32.totalorder %s1172_s12, %s904_s22 }
  0x2a   : > { %p901_p6 = pnand %p899_p3, %p885_p5  ;;  %p907_p4 = scmp.lt.s32.totalorder %s905_s24, %s898_s9 }
  0x2c   : > { %p902_p11 = pneg %p901_p6  ;;  %p908_p10 = por %p907_p4, %p906_p9 }
  0x2e   : > { %p909_p12 = pnand %p908_p10, %p902_p11 }
  0x30   : > { %912 = shalt.err (!%p909_p12)
}
  0x31   : > { %806 = dma.hbm_to_vmem [thread:$0]  (!%p1176_p0), %s1168_s10, 128, %s1172_s12, %s223_s14  }
  0x32   : > { %p1401_p1 = scmp.lt.s32.totalorder %s1061_s20, 3  ;;  %p1402_p2 = scmp.ge.s32.totalorder %s1061_s20, 1 }
  0x33   : > { %s1221_s8 = scalar_lea.hbm %s1390_s1, %s789_s7  ;;  %s250_s9 = scalar_lea.vmem [#allocation7], %s774_s6 }
  0x34   : > { %p1212_p7 = pnand %p1402_p2, %p1401_p1  ;;  %s263_s11 = sshll.u32 %s250_s9, 4  ;;  %s264_s11 = int_to_ptr.vmem [resolvable:$true] %s263_s11 }
  0x35   : > { %s247_s10 = scalar_lea.sflag [#allocation8], %s1159_s5  ;;  %s913_s12 = scalar_lea.hbm %s1221_s8, 128 }
  0x36   : > { %s1403_s21 = scalar_select %p1212_p7, 1, 0 }
  0x37   : > { %p914_p9 = scmp.ne.s32.totalorder %s1221_s8, %s913_s12  ;;  %s918_s7 = scalar_lea.hbm %s1390_s1, 256 }
  0x38   : > { %p919_p3 = scmp.lt.u32.totalorder %s1221_s8, %s1390_s1  ;;  %p920_p6 = scmp.lt.u32.totalorder %s918_s7, %s913_s12 }
  0x39   : > { %p916_p11 = pnand %p914_p9, %p885_p5  ;;  %p922_p10 = scmp.lt.u32.totalorder %s913_s12, %s1221_s8 }
  0x3a   : > { %p921_p4 = por %p920_p6, %p919_p3 }
  0x3b   : > { %p917_p13 = pneg %p916_p11 }
  0x3c   : > { %p923_p12 = por %p922_p10, %p921_p4 }
  0x3e   : > { %p924_p1 = pnand %p923_p12, %p917_p13 }
  0x40   : > { %927 = shalt.err (!%p924_p1)
}
  0x41   : > { %s928_s5 = scalar_lea.vmem %s264_s11, 128  ;;  %s1064_s6 = smov [#allocation7]  }
  0x42   : > { %p929_p2 = scmp.ne.s32.totalorder %s264_s11, %s928_s5  ;;  %s933_s26 = sshll.u32 %s1064_s6, 4  ;;  %s934_s26 = int_to_ptr.vmem [resolvable:$false] %s933_s26 }
  0x43   : > { %s935_s9 = scalar_lea.vmem %s934_s26, 256  ;;  %p936_p8 = scmp.lt.s32.totalorder %s264_s11, %s934_s26 }
  0x44   : > { %p931_p9 = pnand %p929_p2, %p885_p5  ;;  %p937_p7 = scmp.lt.s32.totalorder %s935_s9, %s928_s5 }
  0x46   : > { %p932_p11 = pneg %p931_p9  ;;  %p938_p3 = por %p937_p7, %p936_p8 }
  0x48   : > { %p939_p6 = pnand %p938_p3, %p932_p11 }
  0x4a   : > { %942 = shalt.err (!%p939_p6)
}
  0x4b   : > { %809 = dma.hbm_to_vmem [thread:$0]  (!%p1176_p0), %s1221_s8, 128, %s264_s11, %s247_s10  }
  0x4c   : > { %p1404_p13 = scmp.ne.s32.totalorder %s1403_s21, 0 }
  0x4d   : > { %s1248_s12 = sand.u32 (!%p1404_p13), 1, %s1045_s16   ;;  %p1405_p5 = scmp.ne.s32.totalorder (!%p1404_p13), %s1397_s27, 0 }
  0x4e   : > { %290 = sbr.rel (%p1404_p13) target bundleno = 430 (0x1ae), region = 32  ;;  %s781_s14 = sshll.u32 (!%p1404_p13), %s1248_s12, 3 }
  0x4f   : > { %s293_s22 = scalar_lea.sflag (!%p1404_p13), [#allocation5], %s1248_s12  ;;  %s296_s7 = scalar_lea.vmem (!%p1404_p13), [#allocation4], %s781_s14 }
  0x55   : > { %1024 = dma.done.wait (%p1405_p5), %s293_s22, 128  }
  0x56   : > { %1026 = vsyncadd (%p1405_p5), %s293_s22, 4294967168  ;;  %s302_s13 = scalar_lea.sflag [#allocation8], %s1248_s12  ;;  %s305_s8 = scalar_lea.vmem [#allocation7], %s781_s14 }
  0x57   : > { %1028 = dma.done.wait (%p1405_p5), %s302_s13, 128  }
  0x58   : > { %1030 = vsyncadd (%p1405_p5), %s302_s13, 4294967168  ;;  %p361_p8 = scmp.lt.s32.totalorder %s1053_s18, 1  ;;  %v376_v0 = vlaneseq  ;;  %v1065_v2 = vmov 0.0   ;;  %vm387_vm1 = vcmask 1043456   ;;  %v382_v3 = vld [vmem:[%s296_s7] sm:$0xff]  ;;  %v383_v4 = vld [vmem:[%s305_s8] sm:$0xff] }
  0x59   : > { %v385_v6 = vcombine.high %v382_v3, %v382_v3  ;;  %v388_v7 = vsel %vm387_vm1, %v382_v3, -inf  ;;  %v403_v8 = vcombine.high %v383_v4, %v383_v4  ;;  %v405_v9 = vsel %vm387_vm1, %v383_v4, -inf  ;;  %s785_s25 = sshll.u32 %s1053_s18, 4  ;;  %s342_s5 = scalar_lea.vmem [#allocation9], %s1248_s12 }
  0x5a   : > { %s362_s21 = scalar_select %p361_p8, %s1053_s18, 1  ;;  %vm1264_vm0 = vcmp.lt.s32.totalorder %v376_v0, 256  ;;  %v389_v10 = vrot.slane %v388_v7, 4  ;;  %v406_v11 = vrot.slane %v405_v9, 4  ;;  %vm546_vm3 = vcmask 1040384  }
  0x5b   : > { %380 = vst.msk [vmem:[#allocation2] sm:$0x3] %vm1264_vm0, %v1065_v2  ;;  %381 = vst.msk [vmem:[#allocation3] sm:$0x3] %vm1264_vm0, %v1065_v2  ;;  %v395_v12 = vsel %vm387_vm1, %v385_v6, -inf  ;;  %v412_v13 = vsel %vm387_vm1, %v403_v8, -inf  ;;  %s1307_s7 = scalar_lea.hbm %s1392_s3, %s785_s25 }
  0x5c   : > { %s783_s11 = sshll.u32 %s362_s21, 1  ;;  %v390_v14 = vmax.f32 %v388_v7, %v389_v10  ;;  %v396_v15 = vrot.slane %v395_v12, 4  ;;  %v407_v16 = vmax.f32 %v405_v9, %v406_v11  ;;  %v413_v17 = vrot.slane %v412_v13, 4  ;;  %s605_s6 = sshll.u32 %s342_s5, 4  ;;  %s1309_s6 = int_to_ptr.vmem [resolvable:$true] %s605_s6 }
  0x5d   : > { %s367_s24 = scalar_lea.vmem %s1391_s2, %s783_s11  ;;  %s348_s26 = scalar_lea.vmem [#allocation10], %s1248_s12 }
  0x5e   : > { %v1275_v5 = vld [vmem:[%s367_s24] sm:$0x3]  ;;  %v391_v20 = vrot.slane %v390_v14, 2  ;;  %v397_v21 = vmax.f32 %v395_v12, %v396_v15  ;;  %v408_v22 = vrot.slane %v407_v16, 2  ;;  %v414_v23 = vmax.f32 %v412_v13, %v413_v17  ;;  %s619_s9 = sshll.u32 %s348_s26, 4  ;;  %s588_s8 = scalar_lea.sflag [#allocation6], %s1248_s12  ;;  %s1311_s9 = int_to_ptr.vmem [resolvable:$true] %s619_s9 }
  0x5f   : > { %vm499_vm2 = vcmp.ne.s32.totalorder %v1275_v5, 255  ;;  %s943_s21 = scalar_lea.vmem %s1309_s6, 16  ;;  %p1408_p7 = scmp.ne.s32.totalorder %s1398_s28, 0 }
  0x60   : > { %v784_v19 = vsel %vm499_vm2, 1.0, %v1065_v2  ;;  %v392_v25 = vmax.f32 %v390_v14, %v391_v20  ;;  %v398_v26 = vrot.slane %v397_v21, 2  ;;  %v409_v27 = vmax.f32 %v407_v16, %v408_v22  ;;  %p944_p0 = scmp.ne.s32.totalorder %s1309_s6, %s943_s21  ;;  %s1067_s11 = smov [#allocation9]  }
  0x61   : > { %v415_v28 = vrot.slane %v414_v23, 2  ;;  %s947_s27 = sshll.u32 %s1067_s11, 4  ;;  %s948_s27 = int_to_ptr.vmem [resolvable:$false] %s947_s27 }
  0x62   : > { %v526_v18 = vld [vmem:[#allocation3] sm:$0x3]  ;;  %v393_v29 = vrot.slane %v392_v25, 1  ;;  %v399_v30 = vmax.f32 %v397_v21, %v398_v26  ;;  %v410_v31 = vrot.slane %v409_v27, 1  ;;  %p945_p4 = pnand %p944_p0, %p1408_p7  ;;  %s949_s10 = scalar_lea.vmem %s948_s27, 32 }
  0x63   : > { %v529_v24 = vadd.f32 %v784_v19, %v526_v18  ;;  %v416_v32 = vmax.f32 %v414_v23, %v415_v28  ;;  %p950_p12 = scmp.lt.s32.totalorder %s1309_s6, %s948_s27  ;;  %p951_p1 = scmp.lt.s32.totalorder %s949_s10, %s943_s21 }
  0x64   : > { %v394_v33 = vmax.f32 %v392_v25, %v393_v29  ;;  %v400_v34 = vrot.slane %v399_v30, 1  ;;  %v411_v35 = vmax.f32 %v409_v27, %v410_v31  ;;  %p946_p10 = pneg %p945_p4 }
  0x65   : > { %530 = vst.msk [vmem:[#allocation3] sm:$0x3] %vm1264_vm0, %v529_v24  ;;  %v417_v36 = vrot.slane %v416_v32, 1  ;;  %p952_p2 = por %p951_p1, %p950_p12 }
  0x66   : > { %v401_v37 = vmax.f32 %v399_v30, %v400_v34 }
  0x67   : > { %v418_v38 = vmax.f32 %v416_v32, %v417_v36  ;;  %p953_p9 = pnand %p952_p2, %p946_p10 }
  0x68   : > { %v421_v39 = vcombine.low %v394_v33, %v401_v37  ;;  %v1066_v37 = vmov 1966171168  }
  0x69   : > { %v426_v40 = vcombine.low %v411_v35, %v418_v38  ;;  %v505_v38 = vunpack.c.l.s4 %v1066_v37 }
  0x6a   : > { %v423_v41 = vsub.f32 %v382_v3, %v421_v39 }
  0x6b   : > { %v428_v42 = vsub.f32 %v383_v4, %v426_v40 }
  0x6c   : > { %v429_v43 = vmul.f32 1.442695, %v423_v41 }
  0x6d   : > { %v448_v44 = vmul.f32 1.442695, %v428_v42  ;;  %v469_v46 = vsub.f32 %v428_v42, %v423_v41 }
  0x6e   : > { %871 = vpow2.f32 %v429_v43  ;;  %v506_v43 = vunpack.c.0.s8 %v505_v38 }
  0x6f   : > { %873 = vpow2.f32 %v448_v44  ;;  %v508_v44 = vshrl.u32 %v376_v0, 7 }
  0x78   : > { %v872_v45 = vpop.eup %871 }
  0x79   : > { %v874_v47 = vpop.eup %873  ;;  %v432_v48 = vcombine.high %v872_v45, %v872_v45  ;;  %v434_v49 = vsel %vm387_vm1, %v872_v45, 0.0 }
  0x7a   : > { %v435_v50 = vrot.slane %v434_v49, 4  ;;  %v451_v51 = vcombine.high %v874_v47, %v874_v47  ;;  %v453_v52 = vsel %vm387_vm1, %v874_v47, 0.0  ;;  %v470_v57 = vmul.f32 %v874_v47, %v469_v46 }
  0x7b   : > { %v441_v53 = vsel %vm387_vm1, %v432_v48, 0.0  ;;  %v454_v54 = vrot.slane %v453_v52, 4 }
  0x7c   : > { %v442_v55 = vrot.slane %v441_v53, 4  ;;  %v460_v56 = vsel %vm387_vm1, %v451_v51, 0.0  ;;  %v436_v60 = vadd.f32 %v435_v50, %v434_v49  ;;  %v472_v2 = vcombine.high %v470_v57, %v470_v57 }
  0x7d   : > { %v455_v58 = vadd.f32 %v454_v54, %v453_v52  ;;  %v461_v59 = vrot.slane %v460_v56, 4  ;;  %v474_v7 = vsel %vm387_vm1, %v470_v57, 0.0  ;;  %v509_v49 = vsub.s32 %v506_v43, %v508_v44  ;;  %v500_v52 = vld [vmem:[#allocation2] sm:$0x3] }
  0x7e   : > { %v443_v63 = vadd.f32 %v442_v55, %v441_v53  ;;  %v437_v6 = vrot.slane %v436_v60, 2  ;;  %v481_v11 = vsel %vm387_vm1, %v472_v2, 0.0  ;;  %v475_v14 = vrot.slane %v474_v7, 4 }
  0x7f   : > { %v456_v61 = vrot.slane %v455_v58, 2  ;;  %v462_v62 = vadd.f32 %v461_v59, %v460_v56  ;;  %v482_v17 = vrot.slane %v481_v11, 4  ;;  %v559_v56 = vld [vmem:[#allocation3] sm:$0x3]  ;;  %v538_v57 = vsub.s32 0, %v508_v44 }
  0x80   : > { %v444_v10 = vrot.slane %v443_v63, 2  ;;  %v438_v15 = vadd.f32 %v437_v6, %v436_v60  ;;  %v476_v19 = vadd.f32 %v475_v14, %v474_v7 }
  0x81   : > { %v457_v3 = vadd.f32 %v456_v61, %v455_v58  ;;  %v463_v4 = vrot.slane %v462_v62, 2  ;;  %v483_v21 = vadd.f32 %v482_v17, %v481_v11  ;;  %v542_v58 = vsub.s32 1, %v508_v44 }
  0x82   : > { %v445_v18 = vadd.f32 %v444_v10, %v443_v63  ;;  %v439_v20 = vrot.slane %v438_v15, 1  ;;  %v477_v23 = vrot.slane %v476_v19, 2  ;;  %v564_v0 = vrot.slane %v559_v56, %v538_v57 }
  0x83   : > { %v458_v8 = vrot.slane %v457_v3, 1  ;;  %v464_v9 = vadd.f32 %v463_v4, %v462_v62  ;;  %v484_v25 = vrot.slane %v483_v21, 2  ;;  %v568_v59 = vrot.slane %v559_v56, %v542_v58 }
  0x84   : > { %v446_v22 = vrot.slane %v445_v18, 1  ;;  %v440_v24 = vadd.f32 %v439_v20, %v438_v15  ;;  %v478_v28 = vadd.f32 %v477_v23, %v476_v19 }
  0x85   : > { %v459_v12 = vadd.f32 %v458_v8, %v457_v3  ;;  %v465_v13 = vrot.slane %v464_v9, 1  ;;  %v485_v31 = vadd.f32 %v484_v25, %v483_v21  ;;  %v571_v3 = vsel %vm546_vm3, %v564_v0, 0.0 }
  0x86   : > { %v447_v26 = vadd.f32 %v446_v22, %v445_v18  ;;  %v479_v33 = vrot.slane %v478_v28, 1  ;;  %v572_v4 = vsel %vm546_vm3, %v568_v59, 0.0 }
  0x87   : > { %v466_v16 = vadd.f32 %v465_v13, %v464_v9  ;;  %875 = vrcp.f32 %v459_v12  ;;  %v486_v34 = vrot.slane %v485_v31, 1  ;;  %v573_v5 = vadd.f32 %v572_v4, %v571_v3 }
  0x88   : > { %v480_v35 = vadd.f32 %v479_v33, %v478_v28 }
  0x89   : > { %877 = vrcp.f32 %v466_v16  ;;  %v487_v36 = vadd.f32 %v486_v34, %v485_v31 }
  0x91   : > { %v876_v27 = vpop.eup %875 }
  0x92   : > { %v490_v29 = vmul.f32 %v876_v27, %v440_v24  ;;  %v488_v39 = vmul.f32 %v876_v27, %v480_v35 }
  0x93   : > { %v878_v30 = vpop.eup %877 }
  0x94   : > { %v491_v32 = vmul.f32 %v878_v30, %v447_v26  ;;  %879 = vlog2.f32 %v490_v29  ;;  %v489_v41 = vmul.f32 %v878_v30, %v487_v36 }
  0x96   : > { %881 = vlog2.f32 %v491_v32 }
  0x9e   : > { %v880_v40 = vpop.eup %879 }
  0x9f   : > { %v493_v42 = vmul.f32 0.6931472, %v880_v40 }
  0xa0   : > { %v882_v45 = vpop.eup %881 }
  0xa1   : > { %v495_v46 = vmul.f32 0.6931472, %v882_v45  ;;  %v496_v47 = vadd.f32 %v493_v42, %v488_v39 }
  0xa3   : > { %v497_v48 = vadd.f32 %v495_v46, %v489_v41 }
  0xa5   : > { %v503_v50 = vcombine.low %v496_v47, %v497_v48 }
  0xa7   : > { %v510_v51 = vrot.slane %v503_v50, %v509_v49 }
  0xa9   : > { %v517_v53 = vrot.slane %v510_v51, %v509_v49 }
  0xab   : > { %v519_v54 = vsel %vm499_vm2, %v517_v53, 0.0 }
  0xac   : > { %v520_v55 = vadd.f32 %v519_v54, %v500_v52 }
  0xae   : > { %525 = vst.msk [vmem:[#allocation2] sm:$0x3] %vm1264_vm0, %v520_v55 }
  0xb5   : > { %v534_v60 = vld [vmem:[#allocation2] sm:$0x3] }
  0xb6   : > { %v539_v61 = vrot.slane %v534_v60, %v538_v57  ;;  %v543_v62 = vrot.slane %v534_v60, %v542_v58 }
  0xb8   : > { %v547_v63 = vsel %vm546_vm3, %v539_v61, 0.0  ;;  %v548_v2 = vsel %vm546_vm3, %v543_v62, 0.0 }
  0xb9   : > { %v549_v6 = vadd.f32 %v548_v2, %v547_v63 }
  0xbb   : > { %550 = vadd.xlane.f32.xlu0 %v549_v6 }
  0xbf   : > { %574 = vadd.xlane.f32.xlu0 %v573_v5 }
 0x148   : > { %v551_v7 = vpop.xlane.xlu0 %550 }
 0x149   : > { %v552_v1 = vrot.slane %v551_v7, 4 }
 0x14b   : > { %v553_v8 = vadd.f32 %v552_v1, %v551_v7 }
 0x14c   : > { %v575_v9 = vpop.xlane.xlu0 %574 }
 0x14d   : > { %v554_v10 = vrot.slane %v553_v8, 2  ;;  %v576_v11 = vrot.slane %v575_v9, 4 }
 0x14f   : > { %v577_v12 = vadd.f32 %v576_v11, %v575_v9  ;;  %v555_v13 = vadd.f32 %v554_v10, %v553_v8 }
 0x151   : > { %v578_v14 = vrot.slane %v577_v12, 2  ;;  %v556_v15 = vrot.slane %v555_v13, 1 }
 0x153   : > { %v579_v16 = vadd.f32 %v578_v14, %v577_v12  ;;  %v557_v17 = vadd.f32 %v556_v15, %v555_v13 }
 0x155   : > { %791 = vpush %v557_v17  ;;  %v580_v18 = vrot.slane %v579_v16, 1 }
 0x157   : > { %v581_v19 = vadd.f32 %v580_v18, %v579_v16 }
 0x159   : > { %793 = vpush %v581_v19 }
 0x186   : > { %s792_s13 = spop %791 }
 0x187   : > { %v583_v20 = vstv %s792_s13 }
 0x188   : > { %584 = vst [vmem:[%s342_s5] sm:$0x1] %v583_v20 }
 0x189   : > { %956 = shalt.err (!%p953_p9)
}
 0x18a   : > { %s957_s24 = scalar_lea.hbm %s1307_s7, 16  ;;  %s961_s22 = scalar_lea.hbm %s1392_s3, 32 }
 0x18b   : > { %p958_p11 = scmp.ne.s32.totalorder %s1307_s7, %s957_s24  ;;  %p962_p13 = scmp.lt.u32.totalorder %s1307_s7, %s1392_s3 }
 0x18c   : > { %p963_p5 = scmp.lt.u32.totalorder %s961_s22, %s957_s24  ;;  %p965_p0 = scmp.lt.u32.totalorder %s957_s24, %s1307_s7 }
 0x18d   : > { %p959_p3 = pnand %p958_p11, %p1408_p7 }
 0x18e   : > { %p964_p8 = por %p963_p5, %p962_p13 }
 0x18f   : > { %p960_p6 = pneg %p959_p3 }
 0x190   : > { %p966_p4 = por %p965_p0, %p964_p8 }
 0x192   : > { %p967_p10 = pnand %p966_p4, %p960_p6 }
 0x194   : > { %970 = shalt.err (!%p967_p10)
}
 0x195   : > { %799 = dma.vmem_to_hbm [thread:$0]  (%p1408_p7), %s1309_s6, 16, %s1307_s7, %s588_s8  }
 0x196   : > { %s794_s21 = spop %793  ;;  %s1340_s24 = scalar_lea.hbm %s1393_s4, %s785_s25 }
 0x197   : > { %v585_v21 = vstv %s794_s21  ;;  %s592_s5 = scalar_lea.sflag [#allocation11], %s1248_s12  ;;  %s971_s14 = scalar_lea.vmem %s1311_s9, 16 }
 0x198   : > { %586 = vst [vmem:[%s348_s26] sm:$0x1] %v585_v21  ;;  %p972_p12 = scmp.ne.s32.totalorder %s1311_s9, %s971_s14  ;;  %s1068_s22 = smov [#allocation10]  }
 0x199   : > { %s975_s13 = sshll.u32 %s1068_s22, 4  ;;  %s976_s13 = int_to_ptr.vmem [resolvable:$false] %s975_s13 }
 0x19a   : > { %p973_p1 = pnand %p972_p12, %p1408_p7  ;;  %s977_s6 = scalar_lea.vmem %s976_s13, 32 }
 0x19b   : > { %p978_p9 = scmp.lt.s32.totalorder %s1311_s9, %s976_s13  ;;  %p979_p11 = scmp.lt.s32.totalorder %s977_s6, %s971_s14 }
 0x19c   : > { %p974_p2 = pneg %p973_p1 }
 0x19d   : > { %p980_p3 = por %p979_p11, %p978_p9 }
 0x19f   : > { %p981_p6 = pnand %p980_p3, %p974_p2 }
 0x1a1   : > { %984 = shalt.err (!%p981_p6)
}
 0x1a2   : > { %s985_s18 = scalar_lea.hbm %s1340_s24, 16  ;;  %s989_s26 = scalar_lea.hbm %s1393_s4, 32 }
 0x1a3   : > { %p986_p13 = scmp.ne.s32.totalorder %s1340_s24, %s985_s18  ;;  %p990_p0 = scmp.lt.u32.totalorder %s1340_s24, %s1393_s4 }
 0x1a4   : > { %p991_p4 = scmp.lt.u32.totalorder %s989_s26, %s985_s18  ;;  %p993_p12 = scmp.lt.u32.totalorder %s985_s18, %s1340_s24 }
 0x1a5   : > { %p987_p5 = pnand %p986_p13, %p1408_p7 }
 0x1a6   : > { %p992_p10 = por %p991_p4, %p990_p0 }
 0x1a7   : > { %p988_p8 = pneg %p987_p5 }
 0x1a8   : > { %p994_p1 = por %p993_p12, %p992_p10 }
 0x1aa   : > { %p995_p2 = pnand %p994_p1, %p988_p8 }
 0x1ac   : > { %998 = shalt.err (!%p995_p2)
}
 0x1ad   : > { %800 = dma.vmem_to_hbm [thread:$0]  (%p1408_p7), %s1311_s9, 16, %s1340_s24, %s592_s5  }
 0x1ae PF: > { %s631_s11 = sand.u32 1, %s1041_s15   ;;  %p1409_p9 = scmp.ne.s32.totalorder %s1399_s30, 0 }
 0x1af   : > { %p1410_p11 = scmp.ge.s32.totalorder %s1061_s20, 2  ;;  %s632_s21 = scalar_lea.sflag [#allocation6], %s631_s11 }
 0x1b1   : > { %p811_p3 = pnand %p1410_p11, %p1409_p9 }
 0x1b3   : > { %1032 = dma.done.wait (!%p811_p3), %s632_s21, 16  }
 0x1b4   : > { %1034 = vsyncadd (!%p811_p3), %s632_s21, 4294967280  ;;  %s640_s27 = scalar_lea.sflag [#allocation11], %s631_s11 }
 0x1b5   : > { %1036 = dma.done.wait (!%p811_p3), %s640_s27, 16  }
 0x1b6   : > { %1038 = vsyncadd (!%p811_p3), %s640_s27, 4294967280  ;;  %s27_s20 = sadd.s32 1, %s1061_s20   ;;  %s1411_s15 = smov %s1045_s16 }
 0x1b7   : > { %p24_p6 = scmp.ge.s32.totalorder %s27_s20, 4   ;;  %s1412_s16 = smov %s1049_s17 }
 0x1b8   : > { %s1413_s17 = smov %s1150_s29  ;;  %s1414_s18 = smov %s1057_s19 }
 0x1b9   : > { %s1415_s19 = smov %s1417_s23  ;;  %26 = sbr.rel (!%p24_p6) target bundleno = 10 (0xa), region = 118 }
 0x1c0   :  { %644 = vsyncpa [#allocation5], 1 }
 0x1c1   :  { %646 = vsyncpa [#allocation5 + $0x1], 1 }
 0x1c2   :  { %647 = vsyncpa [#allocation8], 1 }
 0x1c3   :  { %649 = vsyncpa [#allocation8 + $0x1], 1 }
 0x1c4   :  { %650 = vsyncpa [#allocation6], 1 }
 0x1c5   :  { %652 = vsyncpa [#allocation6 + $0x1], 1 }
 0x1c6   :  { %653 = vsyncpa [#allocation11], 1 }
 0x1c7   :  { %655 = vsyncpa [#allocation11 + $0x1], 1 }

</bundles_post_ra>
